<compile_context>
chip_gen: v7x
topology: tpu7x:2x2x1
jax: 0.10.0
libtpu: 0.0.40
codegen_flags: <defaults>
</compile_context>

<pallas_src>
import functools

import jax
import jax.numpy as jnp
from jax.experimental import pallas as pl
from jax.experimental.pallas import tpu as pltpu

_HEADS = ("vad", "snr", "c50")


# --------------------------------------------------------------------------
# Kernel
# --------------------------------------------------------------------------
def _fused_linear_kernel(x_ref, w_ref, b_ref, o_ref, *, compute_dtype):
    # x_ref: (TILE_M, K) f32 (streamed), w_ref: (K, N) bf16 (resident),
    # b_ref: (1, N) f32 (resident), o_ref: (TILE_M, N) f32.
    # Cast the x tile in-register (free vs. an extra HBM pass in the wrapper).
    x = x_ref[...].astype(compute_dtype)
    acc = jnp.dot(x, w_ref[...], preferred_element_type=jnp.float32)
    # f32 epilogue (v5e has no bf16 VPU path).
    o_ref[...] = (acc + b_ref[...]).astype(o_ref.dtype)


# --------------------------------------------------------------------------
# Sizing helpers
# --------------------------------------------------------------------------
def _round_up(x, m):
    return ((x + m - 1) // m) * m


def _vmem_capacity_bytes():
    try:
        return int(pltpu.get_tpu_info().vmem_capacity_bytes)
    except Exception:  # be conservative if the query is unavailable
        return 64 << 20


def _row_axis_semantics():
    """CORE_PARALLEL on v7x (2 TCs/chip), plain 'parallel' elsewhere."""
    try:
        kind = jax.devices()[0].device_kind.lower()
    except Exception:
        kind = ""
    core_parallel = getattr(pltpu, "CORE_PARALLEL", None)
    if core_parallel is not None and "v7" in kind:
        return (core_parallel,)
    return ("parallel",)


def _pick_tile_m(m, k, n, x_bytes, o_bytes):
    """Row tile sized from a VMEM byte budget using PADDED (lane=128) layouts."""
    vmem_cap = _vmem_capacity_bytes()
    k_pad = _round_up(k, 128)
    n_pad = _round_up(n, 128)
    # Budget for the double-buffered pipeline buffers (x + out), per generation:
    # generous on 128 MiB parts (v5e/v6e), tight on v7x's 64 MiB.
    budget = vmem_cap // 3 if vmem_cap >= (128 << 20) else vmem_cap // 4
    per_row = 2 * k_pad * x_bytes + 2 * n_pad * o_bytes   # padded, double-buffered
    rows = budget // max(per_row, 1)
    rows = max(16, min(int(rows), _round_up(m, 16)))
    return (rows // 16) * 16   # bf16 sublane packing: 16-row alignment


# --------------------------------------------------------------------------
# pallas_call wrapper
# --------------------------------------------------------------------------
def fused_linear(x2d, w, b, tile_m=None):
    """x2d: (M, K) f32, w: (K, N) bf16, b: (1, N) f32 -> (M, N) f32."""
    M, K = x2d.shape
    N = w.shape[1]
    x_bytes = jnp.dtype(x2d.dtype).itemsize
    w_bytes = jnp.dtype(w.dtype).itemsize
    o_bytes = 4

    if tile_m is None:
        tile_m = _pick_tile_m(M, K, N, x_bytes, o_bytes)
    tile_m = max(16, (min(int(tile_m), _round_up(M, 16)) // 16) * 16)

    # Ragged last block handled by Pallas (OOB rows never written back).
    grid_m = pl.cdiv(M, tile_m)

    # VMEM actually needed, accounted with padded layouts (lane=128, sublane=8).
    k_pad = _round_up(K, 128)
    n_pad = _round_up(N, 128)
    need = (2 * tile_m * k_pad * x_bytes          # double-buffered x tiles
            + 2 * tile_m * n_pad * o_bytes        # double-buffered out tiles
            + k_pad * n_pad * w_bytes             # resident fused weight
            + 8 * n_pad * 4)                      # resident bias
    vmem_cap = _vmem_capacity_bytes()
    cap = (100 << 20) if vmem_cap >= (128 << 20) else (40 << 20)
    vmem_limit = int(min(max(need * 5 // 4, 32 << 20), cap))

    cost = pl.CostEstimate(
        flops=2 * M * K * N,
        transcendentals=0,
        bytes_accessed=M * K * x_bytes + K * N * w_bytes + M * N * o_bytes + N * 4,
    )

    kernel = functools.partial(_fused_linear_kernel, compute_dtype=w.dtype)

    return pl.pallas_call(
        kernel,
        out_shape=jax.ShapeDtypeStruct((M, N), jnp.float32),
        grid_spec=pltpu.PrefetchScalarGridSpec(
            num_scalar_prefetch=0,
            grid=(grid_m,),
            in_specs=[
                pl.BlockSpec((tile_m, K), lambda i: (i, 0)),  # streamed f32 rows
                pl.BlockSpec((K, N), lambda i: (0, 0)),       # resident weights
                pl.BlockSpec((1, N), lambda i: (0, 0)),       # resident bias
            ],
            out_specs=pl.BlockSpec((tile_m, N), lambda i: (i, 0)),
        ),
        compiler_params=pltpu.CompilerParams(
            dimension_semantics=_row_axis_semantics(),
            vmem_limit_bytes=vmem_limit,
        ),
        cost_estimate=cost,
    )(x2d, w, b)


# --------------------------------------------------------------------------
# Parameters
# --------------------------------------------------------------------------
def init_params(key, in_features, out_features):
    """Deterministic init mimicking nn.Linear (uniform(-1/sqrt(fan_in), ...))."""
    bound = 1.0 / (in_features ** 0.5)
    keys = jax.random.split(key, 6)
    params = {}
    for (name, out_dim), kw, kb in zip(
        [("vad", out_features), ("snr", 1), ("c50", 1)],
        keys[0::2],
        keys[1::2],
    ):
        # Stored (in_features, out_dim): x @ W, same math as PyTorch's x @ W.T.
        w = jax.random.uniform(kw, (in_features, out_dim), jnp.float32,
                               minval=-bound, maxval=bound)
        b = jax.random.uniform(kb, (out_dim,), jnp.float32,
                               minval=-bound, maxval=bound)
        params[name] = (w, b)
    return params


def prepare_params(params, compute_dtype=jnp.bfloat16):
    """Build the fused (K, Ntot) weight / (1, Ntot) bias ONCE (not per forward)."""
    out_dims = tuple(int(params[n][0].shape[1]) for n in _HEADS)
    w_cat = jnp.concatenate([params[n][0] for n in _HEADS], axis=1)
    b_cat = jnp.concatenate([params[n][1] for n in _HEADS], axis=0)[None]
    return {
        "w": w_cat.astype(compute_dtype),   # bf16 weights (tiny, VMEM-resident)
        "b": b_cat.astype(jnp.float32),     # bias stays f32 (f32 epilogue)
        "out_dims": out_dims,
        "compute_dtype": compute_dtype,
    }


# --------------------------------------------------------------------------
# Forward
# --------------------------------------------------------------------------
@functools.partial(jax.jit, static_argnames=("tile_m",))
def _forward_impl(x, w, b, tile_m=None):
    B, S, K = x.shape
    x2d = x.reshape(B * S, K)   # contiguous view; no wrapper-side dtype cast
    return fused_linear(x2d, w, b, tile_m=tile_m)


def custom_classifier_forward(x, prepared, tile_m=None):
    """x: (batch, seq, in_features) -> dict of (batch, seq, out_dim) f32."""
    B, S, _ = x.shape
    out2d = _forward_impl(x, prepared["w"], prepared["b"], tile_m=tile_m)
    out, off = {}, 0
    for name, d in zip(_HEADS, prepared["out_dims"]):
        out[name] = out2d[:, off:off + d].reshape(B, S, d)
        off += d
    return out


# --------------------------------------------------------------------------
# Self-test
# --------------------------------------------------------------------------
if __name__ == "__main__":
    in_features = 32
    out_features = 4
    B, S = 2, 8

    key = jax.random.PRNGKey(0)
    kx, kp = jax.random.split(key)
    x = jax.random.normal(kx, (B, S, in_features), dtype=jnp.float32)
    params = init_params(kp, in_features, out_features)
    prepared = prepare_params(params)

    out = custom_classifier_forward(x, prepared)
    out = jax.block_until_ready(out)

    # Reference check.
    ok = True
    x_bf = x.astype(jnp.bfloat16)
    for name in _HEADS:
        w, b = params[name]
        # Same-precision reference (bf16 x/W, f32 accumulation) -> tight.
        ref_bf = jnp.einsum("bsk,kn->bsn", x_bf, w.astype(jnp.bfloat16),
                            preferred_element_type=jnp.float32) + b
        ok &= bool(jnp.allclose(out[name], ref_bf, atol=1e-3, rtol=1e-3))
        # Full f32 reference -> loose (bounds the bf16 quantization error).
        ref_f32 = x @ w + b
        ok &= bool(jnp.allclose(out[name], ref_f32, atol=5e-2, rtol=5e-2))
        ok &= out[name].shape == ref_f32.shape

    assert ok
    print("KERNEL_OK")
</pallas_src>

<mosaic_0001>
module attributes {stable_mosaic.version = 11 : i64} {
  func.func @_fused_linear_kernel(%arg0: i32, %arg1: memref<16x32xf32, #tpu.memory_space<vmem>>, %arg2: memref<32x6xbf16, #tpu.memory_space<vmem>>, %arg3: memref<1x6xf32, #tpu.memory_space<vmem>>, %arg4: memref<16x6xf32, #tpu.memory_space<vmem>>) attributes {dimension_semantics = [#tpu.dimension_semantics<parallel>], iteration_bounds = array<i64: 1>, scalar_prefetch = 0 : i64, scratch_operands = 0 : i64, tpu.core_type = #tpu.core_type<tc>, window_params = [{transform_indices = @transform_0, window_bounds = array<i64: 16, 32>}, {pipeline_mode = #tpu.pipeline_mode<synchronous>, transform_indices = @transform_1, window_bounds = array<i64: 32, 6>}, {pipeline_mode = #tpu.pipeline_mode<synchronous>, transform_indices = @transform_2, window_bounds = array<i64: 1, 6>}, {transform_indices = @transform_3, window_bounds = array<i64: 16, 6>}]} {
    %c0 = arith.constant 0 : index
    %c0_0 = arith.constant 0 : index
    %0 = vector.load %arg1[%c0, %c0_0] : memref<16x32xf32, #tpu.memory_space<vmem>>, vector<16x32xf32>
    %1 = arith.truncf %0 : vector<16x32xf32> to vector<16x32xbf16>
    %c0_1 = arith.constant 0 : index
    %c0_2 = arith.constant 0 : index
    %2 = vector.load %arg2[%c0_1, %c0_2] : memref<32x6xbf16, #tpu.memory_space<vmem>>, vector<32x6xbf16>
    %cst = arith.constant dense<0.000000e+00> : vector<16x6xf32>
    %3 = tpu.matmul %1, %2, %cst {dimension_numbers = #tpu.dot_dimension_numbers<[1], [0], [0], [1], [0, 0, 1, 1], [], []>} : vector<16x32xbf16>, vector<32x6xbf16>, vector<16x6xf32> -> vector<16x6xf32>
    %c0_3 = arith.constant 0 : index
    %c0_4 = arith.constant 0 : index
    %4 = vector.load %arg3[%c0_3, %c0_4] : memref<1x6xf32, #tpu.memory_space<vmem>>, vector<1x6xf32>
    %5 = vector.broadcast %4 : vector<1x6xf32> to vector<16x6xf32>
    %6 = arith.addf %3, %5 : vector<16x6xf32>
    %c0_5 = arith.constant 0 : index
    %c0_6 = arith.constant 0 : index
    %7 = vector.load %arg4[%c0_5, %c0_6] : memref<16x6xf32, #tpu.memory_space<vmem>>, vector<16x6xf32>
    tpu.vector_store %arg4[%c0_5, %c0_6], %6 {strides = array<i32>} : memref<16x6xf32, #tpu.memory_space<vmem>>, vector<16x6xf32>,
    return
  }
  func.func @transform_0(%arg0: i32) -> (i32, i32) {
    %c0_i32 = arith.constant 0 : i32
    %c0_i32_0 = arith.constant 0 : i32
    return %arg0, %c0_i32 : i32, i32
  }
  func.func @transform_1(%arg0: i32) -> (i32, i32) {
    %c0_i32 = arith.constant 0 : i32
    %c0_i32_0 = arith.constant 0 : i32
    %c0_i32_1 = arith.constant 0 : i32
    return %c0_i32, %c0_i32_0 : i32, i32
  }
  func.func @transform_2(%arg0: i32) -> (i32, i32) {
    %c0_i32 = arith.constant 0 : i32
    %c0_i32_0 = arith.constant 0 : i32
    %c0_i32_1 = arith.constant 0 : i32
    return %c0_i32, %c0_i32_0 : i32, i32
  }
  func.func @transform_3(%arg0: i32) -> (i32, i32) {
    %c0_i32 = arith.constant 0 : i32
    %c0_i32_0 = arith.constant 0 : i32
    return %arg0, %c0_i32 : i32, i32
  }
}

</mosaic_0001>

<bundles_post_ra>
// kernel: _forward_impl.1
= control target key start
LH: loop header
LB: loop body
LE: loop exit
PB: predicated region body
PF: predicated region fallthrough
CT: control target
= control target key end

     0   :  { %v112_v0 = vmov 0.0   ;;  %vm113_vm0 = vmmov 0   ;;  %vm41_vm1 = vcmask 261120   ;;  %vm86_vm2 = vcmask 48128   ;;  %s155_s1 = inlined_call_operand.vmem [shape: bf16[32,6], index: 1, kind: input, shape index: {}]   ;;  %s156_s0 = inlined_call_operand.vmem [shape: f32[16,32], index: 0, kind: input, shape index: {}]   ;;  %s157_s2 = inlined_call_operand.vmem [shape: f32[1,6], index: 2, kind: input, shape index: {}]   ;;  %s158_s3 = inlined_call_operand.vmem [shape: f32[16,6], index: 3, kind: output, shape index: {}]  }
   0x1   :  { %100 = vmatprep.subr.bf16.mxu0 %v112_v0  ;;  %v110_v1 = vld [vmem:[%s155_s1] sm:$0xff]   ;;  %104 = vmatprep.mubr.msk.bf16.mxu0 %vm113_vm0, %v112_v0  ;;  %v111_v2 = vld [vmem:[%s155_s1 + $0x8] sm:$0xff]  }
   0x2   :  { %101 = vmatpush3.bf16.msra.mxu0 %v110_v1  ;;  %v15_v3 = vld [vmem:[%s156_s0] sm:$0xff]  ;;  %v16_v4 = vld [vmem:[%s156_s0 + $0x8] sm:$0xff] }
   0x3   :  { %102 = vmatprep.subr.bf16.mxu0 %v112_v0  ;;  %v17_v5 = vpack.c.bf16 %v16_v4, %v15_v3  ;;  %v93_v6 = vld [vmem:[%s157_s2] ss:$0 sm:$0xff] }
   0x6   :  { %103 = vmatpush3.bf16.msra.mxu0 %v111_v2 }
   0x9   :  { %105 = vmatmul.mubr.msk.bf16.vlgmr.msra.gmra.mrb[0].mxu0 %vm41_vm1, %v17_v5 }
  0xdc   :  { %v79_v7 = vpop.f32.mrb[0].mxu0 }
  0xdd   :  { %v80_v8 = vadd.f32 %v93_v6, %v79_v7  ;;  %v106_v9 = vpop.f32.mrb[1].mxu0 }
  0xde   :  { %v82_v10 = vpop.f32.mrb[2].mxu0 }
  0xdf   :  { %87 = vst.msk [vmem:[%s158_s3] sm:$0xff] %vm86_vm2, %v80_v8  ;;  %v83_v11 = vadd.f32 %v93_v6, %v82_v10  ;;  %v107_v12 = vpop.f32.mrb[3].mxu0 }
  0xe1   :  { %88 = vst.msk [vmem:[%s158_s3 + $0x8] sm:$0xff] %vm86_vm2, %v83_v11 }

</bundles_post_ra>
